<compile_context>
chip_gen: v6e
topology: v6e:2x2x1
jax: 0.10.0
libtpu: 0.0.40
codegen_flags: <defaults>
</compile_context>

<pallas_src>
import functools

import jax
import jax.numpy as jnp
from jax.experimental import pallas as pl
from jax.experimental.pallas import tpu as pltpu


def _mlp_kernel(x_ref, w1_ref, b1_ref, w2_ref, b2_ref, w3_ref, b3_ref, o_ref):
    # Layer 1: Linear + ReLU
    h1 = jnp.dot(x_ref[...], w1_ref[...], preferred_element_type=jnp.float32) + b1_ref[...]
    h1 = jnp.maximum(h1, 0.0)
    # Layer 2: Linear + ReLU
    h2 = jnp.dot(h1, w2_ref[...], preferred_element_type=jnp.float32) + b2_ref[...]
    h2 = jnp.maximum(h2, 0.0)
    # Layer 3: Linear + Sigmoid (exact; lowers to a single EUP tanh)
    z = jnp.dot(h2, w3_ref[...], preferred_element_type=jnp.float32) + b3_ref[...]
    o_ref[...] = jax.nn.sigmoid(z).astype(o_ref.dtype)


@functools.partial(jax.jit, static_argnames=("tile_b",))
def behavioural_forward(x, params, *, tile_b=1024):
    """x: [B, input_dim] float32. params: w1,b1,w2,b2,w3,b3 (w: [in, out], b: [1, out])."""
    w1, b1, w2, b2, w3, b3 = (params[k] for k in ("w1", "b1", "w2", "b2", "w3", "b3"))
    B, in_dim = x.shape
    hid = w1.shape[1]
    out_dim = w3.shape[1]

    # Clamp the batch tile so it never (pointlessly) exceeds the batch; keep it a
    # multiple of 8 so the sublane dim of the block stays legal.
    tile = min(tile_b, pl.cdiv(B, 8) * 8)
    n_tiles = pl.cdiv(B, tile)

    # Weights/biases: full-array blocks with constant index_map -> fetched once,
    # VMEM-resident across all grid iterations.
    const = lambda a: pl.BlockSpec(a.shape, lambda i: (0,) * a.ndim)

    flops = 2 * B * (in_dim * hid + hid * hid + hid * out_dim)
    bytes_accessed = 4 * (
        x.size + w1.size + b1.size + w2.size + b2.size + w3.size + b3.size + B * out_dim
    )

    return pl.pallas_call(
        _mlp_kernel,
        out_shape=jax.ShapeDtypeStruct((B, out_dim), jnp.float32),
        grid=(n_tiles,),
        in_specs=[
            pl.BlockSpec((tile, in_dim), lambda i: (i, 0)),  # x: streamed per batch tile
            const(w1), const(b1), const(w2), const(b2), const(w3), const(b3),
        ],
        out_specs=pl.BlockSpec((tile, out_dim), lambda i: (i, 0)),
        compiler_params=pltpu.CompilerParams(
            dimension_semantics=("parallel",),  # megacore sharding on v7x
        ),
        cost_estimate=pl.CostEstimate(
            flops=flops,
            transcendentals=B * out_dim,
            bytes_accessed=bytes_accessed,
        ),
    )(x, w1, b1, w2, b2, w3, b3)


def init_params(key, input_dim=5, hidden_dim=32, output_dim=2):
    # Mimic PyTorch nn.Linear default init: U(-1/sqrt(fan_in), +1/sqrt(fan_in)).
    ks = jax.random.split(key, 6)

    def lin(kw, kb, fan_in, fan_out):
        bound = 1.0 / jnp.sqrt(jnp.float32(fan_in))
        w = jax.random.uniform(kw, (fan_in, fan_out), jnp.float32, -bound, bound)
        b = jax.random.uniform(kb, (1, fan_out), jnp.float32, -bound, bound)
        return w, b

    w1, b1 = lin(ks[0], ks[1], input_dim, hidden_dim)
    w2, b2 = lin(ks[2], ks[3], hidden_dim, hidden_dim)
    w3, b3 = lin(ks[4], ks[5], hidden_dim, output_dim)
    return {"w1": w1, "b1": b1, "w2": w2, "b2": b2, "w3": w3, "b3": b3}


def reference_forward(x, p):
    h1 = jnp.maximum(x @ p["w1"] + p["b1"], 0.0)
    h2 = jnp.maximum(h1 @ p["w2"] + p["b2"], 0.0)
    return jax.nn.sigmoid(h2 @ p["w3"] + p["b3"])


if __name__ == "__main__":
    key = jax.random.PRNGKey(0)
    k_x, k_p = jax.random.split(key)

    # Small demo shapes; batch=500 with tile_b=128 exercises multiple tiles plus a
    # partial (clipped) edge tile.
    batch, input_dim, hidden_dim, output_dim = 500, 5, 32, 2
    x = jax.random.normal(k_x, (batch, input_dim), jnp.float32)
    params = init_params(k_p, input_dim, hidden_dim, output_dim)

    out = behavioural_forward(x, params, tile_b=128)
    out = jax.block_until_ready(out)

    ref = reference_forward(x, params)
    assert out.shape == (batch, output_dim), out.shape
    assert jnp.allclose(out, ref, atol=1e-5, rtol=1e-5), float(jnp.max(jnp.abs(out - ref)))
    print("KERNEL_OK")
</pallas_src>

<mosaic_0001>
module attributes {stable_mosaic.version = 11 : i64} {
  func.func @_mlp_kernel(%arg0: i32, %arg1: memref<128x5xf32, #tpu.memory_space<vmem>>, %arg2: memref<5x32xf32, #tpu.memory_space<vmem>>, %arg3: memref<1x32xf32, #tpu.memory_space<vmem>>, %arg4: memref<32x32xf32, #tpu.memory_space<vmem>>, %arg5: memref<1x32xf32, #tpu.memory_space<vmem>>, %arg6: memref<32x2xf32, #tpu.memory_space<vmem>>, %arg7: memref<1x2xf32, #tpu.memory_space<vmem>>, %arg8: memref<128x2xf32, #tpu.memory_space<vmem>>) attributes {dimension_semantics = [#tpu.dimension_semantics<parallel>], iteration_bounds = array<i64: 4>, scalar_prefetch = 0 : i64, scratch_operands = 0 : i64, tpu.core_type = #tpu.core_type<tc>, window_params = [{transform_indices = @transform_0, window_bounds = array<i64: 128, 5>}, {pipeline_mode = #tpu.pipeline_mode<synchronous>, transform_indices = @transform_1, window_bounds = array<i64: 5, 32>}, {pipeline_mode = #tpu.pipeline_mode<synchronous>, transform_indices = @transform_2, window_bounds = array<i64: 1, 32>}, {pipeline_mode = #tpu.pipeline_mode<synchronous>, transform_indices = @transform_3, window_bounds = array<i64: 32, 32>}, {pipeline_mode = #tpu.pipeline_mode<synchronous>, transform_indices = @transform_4, window_bounds = array<i64: 1, 32>}, {pipeline_mode = #tpu.pipeline_mode<synchronous>, transform_indices = @transform_5, window_bounds = array<i64: 32, 2>}, {pipeline_mode = #tpu.pipeline_mode<synchronous>, transform_indices = @transform_6, window_bounds = array<i64: 1, 2>}, {transform_indices = @transform_7, window_bounds = array<i64: 128, 2>}]} {
    %c0 = arith.constant 0 : index
    %c0_0 = arith.constant 0 : index
    %0 = vector.load %arg1[%c0, %c0_0] : memref<128x5xf32, #tpu.memory_space<vmem>>, vector<128x5xf32>
    %c0_1 = arith.constant 0 : index
    %c0_2 = arith.constant 0 : index
    %1 = vector.load %arg2[%c0_1, %c0_2] : memref<5x32xf32, #tpu.memory_space<vmem>>, vector<5x32xf32>
    %cst = arith.constant dense<0.000000e+00> : vector<128x32xf32>
    %2 = tpu.matmul %0, %1, %cst {dimension_numbers = #tpu.dot_dimension_numbers<[1], [0], [0], [1], [0, 0, 1, 1], [], []>} : vector<128x5xf32>, vector<5x32xf32>, vector<128x32xf32> -> vector<128x32xf32>
    %c0_3 = arith.constant 0 : index
    %c0_4 = arith.constant 0 : index
    %3 = vector.load %arg3[%c0_3, %c0_4] : memref<1x32xf32, #tpu.memory_space<vmem>>, vector<1x32xf32>
    %4 = vector.broadcast %3 : vector<1x32xf32> to vector<128x32xf32>
    %5 = arith.addf %2, %4 : vector<128x32xf32>
    %cst_5 = arith.constant 0.000000e+00 : f32
    %6 = vector.broadcast %cst_5 : f32 to vector<128x32xf32>
    %7 = arith.maximumf %5, %6 : vector<128x32xf32>
    %c0_6 = arith.constant 0 : index
    %c0_7 = arith.constant 0 : index
    %8 = vector.load %arg4[%c0_6, %c0_7] : memref<32x32xf32, #tpu.memory_space<vmem>>, vector<32x32xf32>
    %cst_8 = arith.constant dense<0.000000e+00> : vector<128x32xf32>
    %9 = tpu.matmul %7, %8, %cst_8 {dimension_numbers = #tpu.dot_dimension_numbers<[1], [0], [0], [1], [0, 0, 1, 1], [], []>} : vector<128x32xf32>, vector<32x32xf32>, vector<128x32xf32> -> vector<128x32xf32>
    %c0_9 = arith.constant 0 : index
    %c0_10 = arith.constant 0 : index
    %10 = vector.load %arg5[%c0_9, %c0_10] : memref<1x32xf32, #tpu.memory_space<vmem>>, vector<1x32xf32>
    %11 = vector.broadcast %10 : vector<1x32xf32> to vector<128x32xf32>
    %12 = arith.addf %9, %11 : vector<128x32xf32>
    %cst_11 = arith.constant 0.000000e+00 : f32
    %13 = vector.broadcast %cst_11 : f32 to vector<128x32xf32>
    %14 = arith.maximumf %12, %13 : vector<128x32xf32>
    %c0_12 = arith.constant 0 : index
    %c0_13 = arith.constant 0 : index
    %15 = vector.load %arg6[%c0_12, %c0_13] : memref<32x2xf32, #tpu.memory_space<vmem>>, vector<32x2xf32>
    %cst_14 = arith.constant dense<0.000000e+00> : vector<128x2xf32>
    %16 = tpu.matmul %14, %15, %cst_14 {dimension_numbers = #tpu.dot_dimension_numbers<[1], [0], [0], [1], [0, 0, 1, 1], [], []>} : vector<128x32xf32>, vector<32x2xf32>, vector<128x2xf32> -> vector<128x2xf32>
    %c0_15 = arith.constant 0 : index
    %c0_16 = arith.constant 0 : index
    %17 = vector.load %arg7[%c0_15, %c0_16] : memref<1x2xf32, #tpu.memory_space<vmem>>, vector<1x2xf32>
    %18 = vector.broadcast %17 : vector<1x2xf32> to vector<128x2xf32>
    %19 = arith.addf %16, %18 : vector<128x2xf32>
    %20 = arith.negf %19 : vector<128x2xf32>
    %21 = math.exp %20 : vector<128x2xf32>
    %cst_17 = arith.constant 1.000000e+00 : f32
    %22 = vector.broadcast %cst_17 : f32 to vector<128x2xf32>
    %23 = arith.addf %22, %21 : vector<128x2xf32>
    %24 = arith.divf %22, %23 : vector<128x2xf32>
    %c0_18 = arith.constant 0 : index
    %c0_19 = arith.constant 0 : index
    %25 = vector.load %arg8[%c0_18, %c0_19] : memref<128x2xf32, #tpu.memory_space<vmem>>, vector<128x2xf32>
    tpu.vector_store %arg8[%c0_18, %c0_19], %24 {strides = array<i32>} : memref<128x2xf32, #tpu.memory_space<vmem>>, vector<128x2xf32>,
    return
  }
  func.func @transform_0(%arg0: i32) -> (i32, i32) {
    %c0_i32 = arith.constant 0 : i32
    %c0_i32_0 = arith.constant 0 : i32
    return %arg0, %c0_i32 : i32, i32
  }
  func.func @transform_1(%arg0: i32) -> (i32, i32) {
    %c0_i32 = arith.constant 0 : i32
    %c0_i32_0 = arith.constant 0 : i32
    %c0_i32_1 = arith.constant 0 : i32
    return %c0_i32, %c0_i32_0 : i32, i32
  }
  func.func @transform_2(%arg0: i32) -> (i32, i32) {
    %c0_i32 = arith.constant 0 : i32
    %c0_i32_0 = arith.constant 0 : i32
    %c0_i32_1 = arith.constant 0 : i32
    return %c0_i32, %c0_i32_0 : i32, i32
  }
  func.func @transform_3(%arg0: i32) -> (i32, i32) {
    %c0_i32 = arith.constant 0 : i32
    %c0_i32_0 = arith.constant 0 : i32
    %c0_i32_1 = arith.constant 0 : i32
    return %c0_i32, %c0_i32_0 : i32, i32
  }
  func.func @transform_4(%arg0: i32) -> (i32, i32) {
    %c0_i32 = arith.constant 0 : i32
    %c0_i32_0 = arith.constant 0 : i32
    %c0_i32_1 = arith.constant 0 : i32
    return %c0_i32, %c0_i32_0 : i32, i32
  }
  func.func @transform_5(%arg0: i32) -> (i32, i32) {
    %c0_i32 = arith.constant 0 : i32
    %c0_i32_0 = arith.constant 0 : i32
    %c0_i32_1 = arith.constant 0 : i32
    return %c0_i32, %c0_i32_0 : i32, i32
  }
  func.func @transform_6(%arg0: i32) -> (i32, i32) {
    %c0_i32 = arith.constant 0 : i32
    %c0_i32_0 = arith.constant 0 : i32
    %c0_i32_1 = arith.constant 0 : i32
    return %c0_i32, %c0_i32_0 : i32, i32
  }
  func.func @transform_7(%arg0: i32) -> (i32, i32) {
    %c0_i32 = arith.constant 0 : i32
    %c0_i32_0 = arith.constant 0 : i32
    return %arg0, %c0_i32 : i32, i32
  }
}

</mosaic_0001>

<bundles_post_ra>
// kernel: behavioural_forward.1
= control target key start
LH: loop header
LB: loop body
LE: loop exit
PB: predicated region body
PF: predicated region fallthrough
CT: control target
= control target key end

     0   :  { %s1876_s24 = smov 0   ;;  %s1878_s25 = smov 0   ;;  %s2168_s0 = inlined_call_operand.vmem [shape: f32[500,5], index: 0, kind: input, shape index: {}]   ;;  %s2169_s1 = inlined_call_operand.vmem [shape: f32[5,32], index: 1, kind: input, shape index: {}]   ;;  %s2170_s2 = inlined_call_operand.vmem [shape: f32[1,32], index: 2, kind: input, shape index: {}]   ;;  %s2171_s3 = inlined_call_operand.vmem [shape: f32[32,32], index: 3, kind: input, shape index: {}]   ;;  %s2172_s4 = inlined_call_operand.vmem [shape: f32[1,32], index: 4, kind: input, shape index: {}]   ;;  %s2173_s5 = inlined_call_operand.vmem [shape: f32[32,2], index: 5, kind: input, shape index: {}]   ;;  %s2174_s6 = inlined_call_operand.vmem [shape: f32[1,2], index: 6, kind: input, shape index: {}]   ;;  %s2175_s7 = inlined_call_operand.vmem [shape: f32[500,2], index: 7, kind: output, shape index: {}]  }
   0x1   :  { %s1880_s26 = smov 0  }
   0x2 LB: > { %s1889_s27 = sadd.s32 4294967295, %s1802_s26   ;;  %s1891_s28 = sadd.s32 1, %s1802_s26   ;;  %s1802_s26 = sphi %s1880_s26, %s2182_s26   ;;  %s1798_s25 = sphi %s1878_s25, %s2181_s25   ;;  %s1794_s24 = sphi %s1876_s24, %s2180_s24  }
   0x3   : > { %s173_s29 = ssub.s32 %s1802_s26, %s1891_s28  ;;  %s176_s30 = sadd.s32 1, %s1798_s25 }
   0x4   : > { %p174_p0 = scmp.eq.s32.totalorder %s173_s29, 0  ;;  %p186_p1 = scmp.ne.s32.totalorder %s1798_s25, %s1794_s24 }
   0x5   : > { %p187_p2 = scmp.eq.s32.totalorder %s1889_s27, 3  ;;  %p1355_p3 = scmp.ge.s32.totalorder %s1802_s26, 1 }
   0x6   : > { %s1899_s8 = scalar_select %p174_p0, %s1798_s25, %s176_s30  }
   0x7   : > { %p1901_p4 = por %p187_p2, %p186_p1  ;;  %p246_p5 = scmp.lt.s32.totalorder %s1802_s26, 5 }
   0x9   : > { %p247_p6 = pnand %p1355_p3, %p246_p5 }
   0xa   : > { %s1909_s12 = sshll.u32 (!%p247_p6), %s1889_s27, 4  ;;  %s278_s26 = sand.u32 (!%p247_p6), 1, %s1794_s24  }
   0xb   : > { %250 = sbr.rel (%p247_p6) target bundleno = 722 (0x2d2), region = 48  ;;  %p286_p7 = scmp.lt.s32.totalorder (!%p247_p6), %s1909_s12, 62 }
   0xc   : > { %s1356_s29 = sshll.u32 (!%p247_p6), %s278_s26, 7 }
   0xd   : > { %s2034_s24 = scalar_lea.vmem (!%p247_p6), [#allocation2], %s1356_s29  }
  0x10   : > { %v316_v0 = vld [vmem:[%s2169_s1] sm:$0x1f]  ;;  %vm373_vm0 = vcmask 1044480   ;;  %v541_v1 = vld [vmem:[%s2171_s3 + $0x18] sm:$0xff]  ;;  %s287_s15 = scalar_select %p286_p7, %s1909_s12, 62  ;;  %vm324_vm1 = vcmask 39936  }
  0x11   : > { %1504 = vmatprep.subr.msk.mxu0 %vm373_vm0, %v316_v0  ;;  %1594 = vmatprep.subr.msk.mxu1 %vm373_vm0, %v316_v0  ;;  %v540_v6 = vld [vmem:[%s2171_s3 + $0x10] sm:$0xff]  ;;  %v539_v12 = vld [vmem:[%s2171_s3 + $0x8] sm:$0xff]  ;;  %v538_v20 = vld [vmem:[%s2171_s3] sm:$0xff]  ;;  %vm549_vm2 = vcmask 261120   ;;  %vm1059_vm3 = vcmask 15360   ;;  %s1084_s30 = ssub.s32 (%p1901_p4), 63, %s1909_s12 }
  0x12   : > { %1505 = vmatpush3.msk.msra.mxu0 %vm373_vm0, %v316_v0  ;;  %1595 = vmatpush3.msk.msra.mxu1 %vm373_vm0, %v316_v0  ;;  %s1358_s16 = sshll.u32 %s287_s15, 3  ;;  %v762_v21 = vld [vmem:[%s2173_s5 + $0x18] sm:$0xff]  ;;  %v761_v22 = vld [vmem:[%s2173_s5 + $0x10] sm:$0xff]  ;;  %v760_v23 = vld [vmem:[%s2173_s5 + $0x8] sm:$0xff]  ;;  %s1444_s10 = sshll.u32 (%p1901_p4), %s1889_s27, 7 }
  0x13   : > { %1530 = vmatprep.subr.mxu1 %v541_v1  ;;  %s1919_s19 = scalar_lea.vmem %s2168_s0, %s1358_s16  ;;  %1562 = vmatprep.subr.mxu0 %v762_v21  ;;  %v1359_v24 = vld [vmem:[%s2170_s2] ss:$0 sm:$0xff]  ;;  %p1085_p8 = scmp.lt.s32.totalorder (%p1901_p4), %s1084_s30, 16 }
  0x14   : > { %v300_v2 = vld [vmem:[%s1919_s19] sm:$0xff]  ;;  %v301_v3 = vld [vmem:[%s1919_s19 + $0x8] sm:$0xff]  ;;  %v302_v4 = vld [vmem:[%s1919_s19 + $0x10] sm:$0xff]  ;;  %s2075_s14 = scalar_lea.vmem (%p1901_p4), %s2175_s7, %s1444_s10  }
  0x15   : > { %1506 = vmatprep.mubr.msk.f32.mxu0 %vm324_vm1, %v300_v2  ;;  %v308_v5 = vld [vmem:[%s1919_s19 + $0x40] sm:$0xff]  ;;  %v303_v7 = vld [vmem:[%s1919_s19 + $0x18] sm:$0xff]  ;;  %v309_v8 = vld [vmem:[%s1919_s19 + $0x48] sm:$0xff] }
  0x16   : > { %1507 = vmatmul.mubr.msk.f32.vlgmr.msra.gmra.mxu0 %vm324_vm1, %v301_v3  ;;  %1518 = vmatprep.mubr.msk.f32.mxu1 %vm324_vm1, %v308_v5  ;;  %v310_v9 = vld [vmem:[%s1919_s19 + $0x50] sm:$0xff]  ;;  %v304_v10 = vld [vmem:[%s1919_s19 + $0x20] sm:$0xff]  ;;  %v311_v11 = vld [vmem:[%s1919_s19 + $0x58] sm:$0xff] }
  0x17   : > { %1509 = vmatprep.mubr.msk.f32.mxu0 %vm324_vm1, %v302_v4  ;;  %1519 = vmatmul.mubr.msk.f32.vlgmr.msra.gmra.mxu1 %vm324_vm1, %v309_v8  ;;  %v312_v13 = vld [vmem:[%s1919_s19 + $0x60] sm:$0xff]  ;;  %v305_v14 = vld [vmem:[%s1919_s19 + $0x28] sm:$0xff]  ;;  %v306_v15 = vld [vmem:[%s1919_s19 + $0x30] sm:$0xff] }
  0x18   : > { %1521 = vmatprep.mubr.msk.f32.mxu1 %vm324_vm1, %v310_v9  ;;  %1531 = vmatpush3.msra.mxu1 %v541_v1  ;;  %v313_v16 = vld [vmem:[%s1919_s19 + $0x68] sm:$0xff]  ;;  %v314_v17 = vld [vmem:[%s1919_s19 + $0x70] sm:$0xff]  ;;  %v307_v18 = vld [vmem:[%s1919_s19 + $0x38] sm:$0xff] }
  0x19   : > { %1532 = vmatprep.subr.mxu1 %v540_v6  ;;  %v315_v19 = vld [vmem:[%s1919_s19 + $0x78] sm:$0xff]  ;;  %1563 = vmatpush3.msra.mxu0 %v762_v21  ;;  %v759_v9 = vld [vmem:[%s2173_s5] sm:$0xff] }
  0x1a   : > { %1510 = vmatmul.mubr.msk.f32.gmra.mxu0 %vm324_vm1, %v303_v7  ;;  %1533 = vmatpush3.msra.mxu1 %v540_v6 }
  0x1b   : > { %1512 = vmatprep.mubr.msk.f32.mxu0 %vm324_vm1, %v304_v10  ;;  %1522 = vmatmul.mubr.msk.f32.gmra.mxu1 %vm324_vm1, %v311_v11  ;;  %v1377_v10 = vld [vmem:[%s2172_s4] ss:$0 sm:$0xff] }
  0x1c   : > { %1534 = vmatprep.subr.mxu1 %v539_v12  ;;  %1524 = vmatprep.mubr.msk.f32.mxu1 %vm324_vm1, %v312_v13 }
  0x1d   : > { %1535 = vmatpush3.msra.mxu1 %v539_v12  ;;  %1564 = vmatprep.subr.mxu0 %v761_v22 }
  0x1e   : > { %1513 = vmatmul.mubr.msk.f32.gmra.mxu0 %vm324_vm1, %v305_v14  ;;  %1536 = vmatprep.subr.mxu1 %v538_v20 }
  0x1f   : > { %1515 = vmatprep.mubr.msk.f32.mxu0 %vm324_vm1, %v306_v15  ;;  %1525 = vmatmul.mubr.msk.f32.gmra.mxu1 %vm324_vm1, %v313_v16 }
  0x20   : > { %1527 = vmatprep.mubr.msk.f32.mxu1 %vm324_vm1, %v314_v17  ;;  %1537 = vmatpush3.msra.mxu1 %v538_v20 }
  0x21   : > { %1565 = vmatpush3.msra.mxu0 %v761_v22 }
  0x22   : > { %1516 = vmatmul.mubr.msk.f32.gmra.mxu0 %vm324_vm1, %v307_v18  ;;  %1566 = vmatprep.subr.mxu0 %v760_v23 }
  0x23   : > { %1528 = vmatmul.mubr.msk.f32.gmra.mxu1 %vm324_vm1, %v315_v19  ;;  %1567 = vmatpush3.msra.mxu0 %v760_v23 }
  0x24   : > { %1568 = vmatprep.subr.mxu0 %v759_v9 }
  0x25   : > { %1569 = vmatpush3.msra.mxu0 %v759_v9 }
  0xd6   : > { %v1508_v25 = vpop.f32.mrf.mxu0 }
  0xd7   : > { %v449_v26 = vadd.f32 %v1508_v25, %v1359_v24  ;;  %v1520_v28 = vpop.f32.mrf.mxu1 }
  0xd8   : > { %v443_v27 = vpop.f32.mrf.mxu0  ;;  %v489_v58 = vadd.f32 %v1520_v28, %v1359_v24 }
  0xd9   : > { %v444_v29 = vadd.f32 %v1359_v24, %v443_v27  ;;  %v483_v31 = vpop.f32.mrf.mxu1  ;;  %v523_v33 = vmax.f32 %v449_v26, 0.0 }
  0xda   : > { %v1511_v30 = vpop.f32.mrf.mxu0  ;;  %v484_v48 = vadd.f32 %v1359_v24, %v483_v31  ;;  %v531_v62 = vmax.f32 %v489_v58, 0.0 }
  0xdb   : > { %v522_v32 = vmax.f32 %v444_v29, 0.0  ;;  %v459_v34 = vadd.f32 %v1511_v30, %v1359_v24  ;;  %v1523_v36 = vpop.f32.mrf.mxu1 }
  0xdc   : > { %v453_v35 = vpop.f32.mrf.mxu0  ;;  %v530_v55 = vmax.f32 %v484_v48, 0.0  ;;  %v499_v63 = vadd.f32 %v1523_v36, %v1359_v24 }
  0xdd   : > { %v454_v37 = vadd.f32 %v1359_v24, %v453_v35  ;;  %1538 = vmatprep.mubr.msk.f32.mxu1 %vm549_vm2, %v522_v32  ;;  %v493_v39 = vpop.f32.mrf.mxu1  ;;  %v525_v41 = vmax.f32 %v459_v34, 0.0 }
  0xde   : > { %v1514_v38 = vpop.f32.mrf.mxu0  ;;  %1539 = vmatmul.mubr.msk.f32.vlgmr.msra.gmra.mxu1 %vm549_vm2, %v523_v33  ;;  %v494_v56 = vadd.f32 %v1359_v24, %v493_v39  ;;  %v533_v3 = vmax.f32 %v499_v63, 0.0 }
  0xdf   : > { %v524_v40 = vmax.f32 %v454_v37, 0.0  ;;  %v469_v42 = vadd.f32 %v1514_v38, %v1359_v24  ;;  %v1526_v44 = vpop.f32.mrf.mxu1 }
  0xe0   : > { %v463_v43 = vpop.f32.mrf.mxu0  ;;  %v532_v60 = vmax.f32 %v494_v56, 0.0  ;;  %v509_v4 = vadd.f32 %v1526_v44, %v1359_v24 }
  0xe1   : > { %v464_v45 = vadd.f32 %v1359_v24, %v463_v43  ;;  %1541 = vmatprep.mubr.msk.f32.mxu1 %vm549_vm2, %v524_v40  ;;  %v527_v49 = vmax.f32 %v469_v42, 0.0  ;;  %v503_v52 = vpop.f32.mrf.mxu1 }
  0xe2   : > { %v1517_v46 = vpop.f32.mrf.mxu0  ;;  %1542 = vmatmul.mubr.msk.f32.gmra.mxu1 %vm549_vm2, %v525_v41  ;;  %v504_v61 = vadd.f32 %v1359_v24, %v503_v52  ;;  %v535_v6 = vmax.f32 %v509_v4, 0.0 }
  0xe3   : > { %v526_v47 = vmax.f32 %v464_v45, 0.0  ;;  %v479_v50 = vadd.f32 %v1517_v46, %v1359_v24  ;;  %v1529_v59 = vpop.f32.mrf.mxu1 }
  0xe4   : > { %v473_v51 = vpop.f32.mrf.mxu0  ;;  %v534_v1 = vmax.f32 %v504_v61, 0.0  ;;  %v519_v7 = vadd.f32 %v1529_v59, %v1359_v24  ;;  %v2015_v59 = vld [vmem:[%s2174_s6] ss:$0 sm:$0xff] }
  0xe5   : > { %v474_v53 = vadd.f32 %v1359_v24, %v473_v51  ;;  %1544 = vmatprep.mubr.msk.f32.mxu1 %vm549_vm2, %v526_v47  ;;  %v529_v57 = vmax.f32 %v479_v50, 0.0  ;;  %v513_v0 = vpop.f32.mrf.mxu1 }
  0xe6   : > { %1545 = vmatmul.mubr.msk.f32.gmra.mxu1 %vm549_vm2, %v527_v49  ;;  %v514_v2 = vadd.f32 %v1359_v24, %v513_v0  ;;  %v537_v8 = vmax.f32 %v519_v7, 0.0 }
  0xe7   : > { %v528_v54 = vmax.f32 %v474_v53, 0.0 }
  0xe8   : > { %v536_v5 = vmax.f32 %v514_v2, 0.0 }
  0xe9   : > { %1547 = vmatprep.mubr.msk.f32.mxu1 %vm549_vm2, %v528_v54 }
  0xea   : > { %1548 = vmatmul.mubr.msk.f32.gmra.mxu1 %vm549_vm2, %v529_v57 }
  0xeb   : > { %1550 = vmatprep.mubr.msk.f32.mxu1 %vm549_vm2, %v530_v55 }
  0xee   : > { %1551 = vmatmul.mubr.msk.f32.gmra.mxu1 %vm549_vm2, %v531_v62 }
  0xef   : > { %1553 = vmatprep.mubr.msk.f32.mxu1 %vm549_vm2, %v532_v60 }
  0xf2   : > { %1554 = vmatmul.mubr.msk.f32.gmra.mxu1 %vm549_vm2, %v533_v3 }
  0xf3   : > { %1556 = vmatprep.mubr.msk.f32.mxu1 %vm549_vm2, %v534_v1 }
  0xf6   : > { %1557 = vmatmul.mubr.msk.f32.gmra.mxu1 %vm549_vm2, %v535_v6 }
  0xf7   : > { %1559 = vmatprep.mubr.msk.f32.mxu1 %vm549_vm2, %v536_v5 }
  0xfa   : > { %1560 = vmatmul.mubr.msk.f32.gmra.mxu1 %vm549_vm2, %v537_v8 }
 0x19e   : > { %v1540_v11 = vpop.f32.mrf.mxu1 }
 0x19f   : > { %v670_v12 = vadd.f32 %v1540_v11, %v1377_v10 }
 0x1a0   : > { %v664_v13 = vpop.f32.mrf.mxu1 }
 0x1a1   : > { %v665_v14 = vadd.f32 %v1377_v10, %v664_v13  ;;  %v744_v17 = vmax.f32 %v670_v12, 0.0 }
 0x1a2   : > { %v1543_v15 = vpop.f32.mrf.mxu1 }
 0x1a3   : > { %v743_v16 = vmax.f32 %v665_v14, 0.0  ;;  %v680_v18 = vadd.f32 %v1543_v15, %v1377_v10 }
 0x1a4   : > { %v674_v19 = vpop.f32.mrf.mxu1 }
 0x1a5   : > { %v675_v20 = vadd.f32 %v1377_v10, %v674_v19  ;;  %1570 = vmatprep.mubr.msk.f32.mxu0 %vm549_vm2, %v743_v16  ;;  %v746_v23 = vmax.f32 %v680_v18, 0.0 }
 0x1a6   : > { %v1546_v21 = vpop.f32.mrf.mxu1  ;;  %1571 = vmatmul.mubr.msk.f32.vlgmr.msra.gmra.mxu0 %vm549_vm2, %v744_v17 }
 0x1a7   : > { %v745_v22 = vmax.f32 %v675_v20, 0.0  ;;  %v690_v24 = vadd.f32 %v1546_v21, %v1377_v10 }
 0x1a8   : > { %v684_v25 = vpop.f32.mrf.mxu1 }
 0x1a9   : > { %v685_v26 = vadd.f32 %v1377_v10, %v684_v25  ;;  %1573 = vmatprep.mubr.msk.f32.mxu0 %vm549_vm2, %v745_v22  ;;  %v748_v29 = vmax.f32 %v690_v24, 0.0 }
 0x1aa   : > { %v1549_v27 = vpop.f32.mrf.mxu1  ;;  %1574 = vmatmul.mubr.msk.f32.gmra.mxu0 %vm549_vm2, %v746_v23 }
 0x1ab   : > { %v747_v28 = vmax.f32 %v685_v26, 0.0  ;;  %v700_v30 = vadd.f32 %v1549_v27, %v1377_v10 }
 0x1ac   : > { %v694_v31 = vpop.f32.mrf.mxu1 }
 0x1ad   : > { %v695_v32 = vadd.f32 %v1377_v10, %v694_v31  ;;  %1576 = vmatprep.mubr.msk.f32.mxu0 %vm549_vm2, %v747_v28  ;;  %v750_v35 = vmax.f32 %v700_v30, 0.0 }
 0x1ae   : > { %v1552_v33 = vpop.f32.mrf.mxu1  ;;  %1577 = vmatmul.mubr.msk.f32.gmra.mxu0 %vm549_vm2, %v748_v29 }
 0x1af   : > { %v749_v34 = vmax.f32 %v695_v32, 0.0  ;;  %v710_v36 = vadd.f32 %v1552_v33, %v1377_v10 }
 0x1b0   : > { %v704_v37 = vpop.f32.mrf.mxu1 }
 0x1b1   : > { %v705_v38 = vadd.f32 %v1377_v10, %v704_v37  ;;  %1579 = vmatprep.mubr.msk.f32.mxu0 %vm549_vm2, %v749_v34  ;;  %v752_v41 = vmax.f32 %v710_v36, 0.0 }
 0x1b2   : > { %v1555_v39 = vpop.f32.mrf.mxu1  ;;  %1580 = vmatmul.mubr.msk.f32.gmra.mxu0 %vm549_vm2, %v750_v35 }
 0x1b3   : > { %v751_v40 = vmax.f32 %v705_v38, 0.0  ;;  %v720_v42 = vadd.f32 %v1555_v39, %v1377_v10 }
 0x1b4   : > { %v714_v43 = vpop.f32.mrf.mxu1 }
 0x1b5   : > { %v715_v44 = vadd.f32 %v1377_v10, %v714_v43  ;;  %1582 = vmatprep.mubr.msk.f32.mxu0 %vm549_vm2, %v751_v40  ;;  %v754_v47 = vmax.f32 %v720_v42, 0.0 }
 0x1b6   : > { %v1558_v45 = vpop.f32.mrf.mxu1  ;;  %1583 = vmatmul.mubr.msk.f32.gmra.mxu0 %vm549_vm2, %v752_v41 }
 0x1b7   : > { %v753_v46 = vmax.f32 %v715_v44, 0.0  ;;  %v730_v48 = vadd.f32 %v1558_v45, %v1377_v10 }
 0x1b8   : > { %v724_v49 = vpop.f32.mrf.mxu1 }
 0x1b9   : > { %v725_v50 = vadd.f32 %v1377_v10, %v724_v49  ;;  %1585 = vmatprep.mubr.msk.f32.mxu0 %vm549_vm2, %v753_v46  ;;  %v756_v53 = vmax.f32 %v730_v48, 0.0 }
 0x1ba   : > { %v1561_v51 = vpop.f32.mrf.mxu1  ;;  %1586 = vmatmul.mubr.msk.f32.gmra.mxu0 %vm549_vm2, %v754_v47 }
 0x1bb   : > { %v755_v52 = vmax.f32 %v725_v50, 0.0  ;;  %v740_v54 = vadd.f32 %v1561_v51, %v1377_v10 }
 0x1bc   : > { %v734_v55 = vpop.f32.mrf.mxu1 }
 0x1bd   : > { %v735_v56 = vadd.f32 %v1377_v10, %v734_v55  ;;  %1588 = vmatprep.mubr.msk.f32.mxu0 %vm549_vm2, %v755_v52  ;;  %v758_v58 = vmax.f32 %v740_v54, 0.0 }
 0x1be   : > { %1589 = vmatmul.mubr.msk.f32.gmra.mxu0 %vm549_vm2, %v756_v53 }
 0x1bf   : > { %v757_v57 = vmax.f32 %v735_v56, 0.0 }
 0x1c1   : > { %1591 = vmatprep.mubr.msk.f32.mxu0 %vm549_vm2, %v757_v57 }
 0x1c2   : > { %1592 = vmatmul.mubr.msk.f32.gmra.mxu0 %vm549_vm2, %v758_v58 }
 0x266   : > { %v1572_v60 = vpop.f32.mrf.mxu0 }
 0x267   : > { %v890_v61 = vadd.f32 %v1572_v60, %v2015_v59 }
 0x268   : > { %v884_v62 = vpop.f32.mrf.mxu0 }
 0x269   : > { %v1412_v63 = vmul.f32 -1.442695, %v890_v61  ;;  %v885_v0 = vadd.f32 %v2015_v59, %v884_v62 }
 0x26a   : > { %v1575_v1 = vpop.f32.mrf.mxu0 }
 0x26b   : > { %1684 = vpow2.f32 %v1412_v63  ;;  %v1411_v2 = vmul.f32 -1.442695, %v885_v0  ;;  %v900_v3 = vadd.f32 %v1575_v1, %v2015_v59 }
 0x26c   : > { %v894_v4 = vpop.f32.mrf.mxu0 }
 0x26d   : > { %1686 = vpow2.f32 %v1411_v2  ;;  %v1414_v5 = vmul.f32 -1.442695, %v900_v3  ;;  %v895_v6 = vadd.f32 %v2015_v59, %v894_v4 }
 0x26e   : > { %v1578_v7 = vpop.f32.mrf.mxu0 }
 0x26f   : > { %1688 = vpow2.f32 %v1414_v5  ;;  %v1413_v8 = vmul.f32 -1.442695, %v895_v6  ;;  %v910_v9 = vadd.f32 %v1578_v7, %v2015_v59 }
 0x270   : > { %v904_v10 = vpop.f32.mrf.mxu0 }
 0x271   : > { %1690 = vpow2.f32 %v1413_v8  ;;  %v1416_v11 = vmul.f32 -1.442695, %v910_v9  ;;  %v905_v12 = vadd.f32 %v2015_v59, %v904_v10 }
 0x272   : > { %v1581_v13 = vpop.f32.mrf.mxu0 }
 0x273   : > { %1692 = vpow2.f32 %v1416_v11  ;;  %v1415_v14 = vmul.f32 -1.442695, %v905_v12  ;;  %v920_v15 = vadd.f32 %v1581_v13, %v2015_v59 }
 0x274   : > { %v914_v16 = vpop.f32.mrf.mxu0 }
 0x275   : > { %1694 = vpow2.f32 %v1415_v14  ;;  %v1418_v17 = vmul.f32 -1.442695, %v920_v15  ;;  %v915_v18 = vadd.f32 %v2015_v59, %v914_v16 }
 0x276   : > { %v1584_v19 = vpop.f32.mrf.mxu0 }
 0x277   : > { %1696 = vpow2.f32 %v1418_v17  ;;  %v1417_v20 = vmul.f32 -1.442695, %v915_v18  ;;  %v930_v21 = vadd.f32 %v1584_v19, %v2015_v59 }
 0x278   : > { %v1685_v22 = vpop.eup %1684  ;;  %v924_v23 = vpop.f32.mrf.mxu0 }
 0x279   : > { %v1012_v24 = vadd.f32 1.0, %v1685_v22  ;;  %1698 = vpow2.f32 %v1417_v20  ;;  %v1420_v25 = vmul.f32 -1.442695, %v930_v21  ;;  %v925_v26 = vadd.f32 %v2015_v59, %v924_v23 }
 0x27a   : > { %v1687_v27 = vpop.eup %1686  ;;  %v1587_v28 = vpop.f32.mrf.mxu0 }
 0x27b   : > { %1700 = vrcp.f32 %v1012_v24  ;;  %v1011_v29 = vadd.f32 1.0, %v1687_v27  ;;  %v1419_v30 = vmul.f32 -1.442695, %v925_v26  ;;  %v940_v31 = vadd.f32 %v1587_v28, %v2015_v59 }
 0x27c   : > { %v1689_v32 = vpop.eup %1688  ;;  %1702 = vpow2.f32 %v1420_v25  ;;  %v934_v33 = vpop.f32.mrf.mxu0 }
 0x27d   : > { %1704 = vrcp.f32 %v1011_v29  ;;  %v1014_v34 = vadd.f32 1.0, %v1689_v32  ;;  %v1422_v35 = vmul.f32 -1.442695, %v940_v31  ;;  %v935_v36 = vadd.f32 %v2015_v59, %v934_v33 }
 0x27e   : > { %v1691_v37 = vpop.eup %1690  ;;  %1706 = vpow2.f32 %v1419_v30  ;;  %v1590_v38 = vpop.f32.mrf.mxu0 }
 0x27f   : > { %1708 = vrcp.f32 %v1014_v34  ;;  %v1013_v39 = vadd.f32 1.0, %v1691_v37  ;;  %v1421_v40 = vmul.f32 -1.442695, %v935_v36  ;;  %v950_v41 = vadd.f32 %v1590_v38, %v2015_v59 }
 0x280   : > { %v1693_v42 = vpop.eup %1692  ;;  %1710 = vpow2.f32 %v1422_v35  ;;  %v944_v43 = vpop.f32.mrf.mxu0 }
 0x281   : > { %1712 = vrcp.f32 %v1013_v39  ;;  %v1016_v44 = vadd.f32 1.0, %v1693_v42  ;;  %v1424_v45 = vmul.f32 -1.442695, %v950_v41  ;;  %v945_v46 = vadd.f32 %v2015_v59, %v944_v43 }
 0x282   : > { %v1695_v47 = vpop.eup %1694  ;;  %1714 = vpow2.f32 %v1421_v40  ;;  %v1593_v48 = vpop.f32.mrf.mxu0 }
 0x283   : > { %1716 = vrcp.f32 %v1016_v44  ;;  %v1015_v49 = vadd.f32 1.0, %v1695_v47  ;;  %v1423_v50 = vmul.f32 -1.442695, %v945_v46  ;;  %v960_v51 = vadd.f32 %v1593_v48, %v2015_v59 }
 0x284   : > { %v1697_v52 = vpop.eup %1696  ;;  %1718 = vpow2.f32 %v1424_v45  ;;  %v954_v53 = vpop.f32.mrf.mxu0 }
 0x285   : > { %1720 = vrcp.f32 %v1015_v49  ;;  %v1018_v54 = vadd.f32 1.0, %v1697_v52  ;;  %v1426_v55 = vmul.f32 -1.442695, %v960_v51  ;;  %v955_v56 = vadd.f32 %v2015_v59, %v954_v53 }
 0x286   : > { %v1699_v57 = vpop.eup %1698  ;;  %1722 = vpow2.f32 %v1423_v50 }
 0x287   : > { %1724 = vrcp.f32 %v1018_v54  ;;  %v1017_v58 = vadd.f32 1.0, %v1699_v57  ;;  %v1425_v60 = vmul.f32 -1.442695, %v955_v56 }
 0x288   : > { %v1701_v61 = vpop.eup %1700  ;;  %1726 = vpow2.f32 %v1426_v55 }
 0x289   : > { %v1703_v62 = vpop.eup %1702  ;;  %1061 = vst.msk [vmem:[%s2034_s24 + $0x8] sm:$0xff] %vm1059_vm3, %v1701_v61  ;;  %1728 = vrcp.f32 %v1017_v58 }
 0x28a   : > { %v1705_v63 = vpop.eup %1704  ;;  %v1020_v59 = vadd.f32 1.0, %v1703_v62  ;;  %1730 = vpow2.f32 %v1425_v60 }
 0x28b   : > { %v1707_v0 = vpop.eup %1706  ;;  %1060 = vst.msk [vmem:[%s2034_s24] sm:$0xff] %vm1059_vm3, %v1705_v63 }
 0x28c   : > { %v1709_v1 = vpop.eup %1708  ;;  %1732 = vrcp.f32 %v1020_v59  ;;  %v1019_v2 = vadd.f32 1.0, %v1707_v0 }
 0x28d   : > { %v1711_v3 = vpop.eup %1710  ;;  %1063 = vst.msk [vmem:[%s2034_s24 + $0x18] sm:$0xff] %vm1059_vm3, %v1709_v1 }
 0x28e   : > { %v1713_v4 = vpop.eup %1712  ;;  %1734 = vrcp.f32 %v1019_v2  ;;  %v1022_v5 = vadd.f32 1.0, %v1711_v3 }
 0x28f   : > { %v1715_v6 = vpop.eup %1714  ;;  %1062 = vst.msk [vmem:[%s2034_s24 + $0x10] sm:$0xff] %vm1059_vm3, %v1713_v4 }
 0x290   : > { %v1717_v7 = vpop.eup %1716  ;;  %1736 = vrcp.f32 %v1022_v5  ;;  %v1021_v8 = vadd.f32 1.0, %v1715_v6 }
 0x291   : > { %v1719_v9 = vpop.eup %1718  ;;  %1065 = vst.msk [vmem:[%s2034_s24 + $0x28] sm:$0xff] %vm1059_vm3, %v1717_v7 }
 0x292   : > { %v1721_v10 = vpop.eup %1720  ;;  %1738 = vrcp.f32 %v1021_v8  ;;  %v1024_v11 = vadd.f32 1.0, %v1719_v9 }
 0x293   : > { %v1723_v12 = vpop.eup %1722  ;;  %1064 = vst.msk [vmem:[%s2034_s24 + $0x20] sm:$0xff] %vm1059_vm3, %v1721_v10 }
 0x294   : > { %v1725_v13 = vpop.eup %1724  ;;  %1740 = vrcp.f32 %v1024_v11  ;;  %v1023_v14 = vadd.f32 1.0, %v1723_v12 }
 0x295   : > { %v1727_v15 = vpop.eup %1726  ;;  %1067 = vst.msk [vmem:[%s2034_s24 + $0x38] sm:$0xff] %vm1059_vm3, %v1725_v13 }
 0x296   : > { %v1729_v16 = vpop.eup %1728  ;;  %1742 = vrcp.f32 %v1023_v14  ;;  %v1026_v17 = vadd.f32 1.0, %v1727_v15 }
 0x297   : > { %v1731_v18 = vpop.eup %1730  ;;  %1066 = vst.msk [vmem:[%s2034_s24 + $0x30] sm:$0xff] %vm1059_vm3, %v1729_v16 }
 0x298   : > { %1744 = vrcp.f32 %v1026_v17  ;;  %v1025_v19 = vadd.f32 1.0, %v1731_v18 }
 0x299   : > { %v1733_v20 = vpop.eup %1732 }
 0x29a   : > { %1069 = vst.msk [vmem:[%s2034_s24 + $0x48] sm:$0xff] %vm1059_vm3, %v1733_v20  ;;  %1746 = vrcp.f32 %v1025_v19 }
 0x29b   : > { %v1735_v21 = vpop.eup %1734 }
 0x29c   : > { %1068 = vst.msk [vmem:[%s2034_s24 + $0x40] sm:$0xff] %vm1059_vm3, %v1735_v21 }
 0x29d   : > { %v1737_v22 = vpop.eup %1736 }
 0x29e   : > { %1071 = vst.msk [vmem:[%s2034_s24 + $0x58] sm:$0xff] %vm1059_vm3, %v1737_v22 }
 0x29f   : > { %v1739_v23 = vpop.eup %1738 }
 0x2a0   : > { %1070 = vst.msk [vmem:[%s2034_s24 + $0x50] sm:$0xff] %vm1059_vm3, %v1739_v23 }
 0x2a1   : > { %v1741_v24 = vpop.eup %1740 }
 0x2a2   : > { %1073 = vst.msk [vmem:[%s2034_s24 + $0x68] sm:$0xff] %vm1059_vm3, %v1741_v24 }
 0x2a3   : > { %v1743_v25 = vpop.eup %1742 }
 0x2a4   : > { %1072 = vst.msk [vmem:[%s2034_s24 + $0x60] sm:$0xff] %vm1059_vm3, %v1743_v25  ;;  %1082 = sbr.rel (!%p1901_p4) target bundleno = 722 (0x2d2), region = 52 }
 0x2a5   : > { %v1745_v26 = vpop.eup %1744 }
 0x2a6   : > { %1075 = vst.msk [vmem:[%s2034_s24 + $0x78] sm:$0xff] %vm1059_vm3, %v1745_v26 }
 0x2a7   : > { %v1747_v27 = vpop.eup %1746 }
 0x2a8   : > { %1074 = vst.msk [vmem:[%s2034_s24 + $0x70] sm:$0xff] %vm1059_vm3, %v1747_v27 }
 0x2a9   : > { %s2184_s30 = smov (!%p1085_p8, %s1084_s30), 16 }
 0x2aa   : > { %s1429_s15 = sshll.u32 %s2184_s30, 7 }
 0x2ab   : > { %p1432_p9 = scmp.eq.s32.totalorder %s1429_s15, 0 }
 0x2ac   : > { %s2081_s16 = sshrl.u32 (!%p1432_p9), %s2184_s30, 4 }
 0x2ad   : > { %1093 = sbr.rel (%p1432_p9) target bundleno = 722 (0x2d2), region = 56  ;;  %p1433_p10 = scmp.le.s32.totalorder (!%p1432_p9), %s2081_s16, 0 }
 0x2b2   : > { %1308 = sbr.rel (%p1433_p10) target bundleno = 705 (0x2c1), region = 132  ;;  %s2177_s27 = smov (!%p1433_p10), %s2075_s14 }
 0x2b3   : > { %s2178_s9 = smov (!%p1433_p10), %s2034_s24  ;;  %s2090_s12 = smov (!%p1433_p10), 0  }
 0x2b4   : > { %s2092_s17 = smov (!%p1433_p10), 0  }
 0x2b7 LB: >> { %v1186_v28 = vld [vmem:[%s1810_s9] sm:$0xff]  ;;  %v1188_v29 = vld [vmem:[%s1810_s9 + $0x8] sm:$0xff]  ;;  %v1190_v30 = vld [vmem:[%s1810_s9 + $0x10] sm:$0xff]  ;;  %s1218_s18 = sadd.s32 1, %s1814_s12  ;;  %s1180_s17 = sadd.s32 1, %s1818_s17   ;;  %s1818_s17 = sphi %s2092_s17, %s1180_s17   ;;  %s1814_s12 = sphi %s2090_s12, %s2179_s12   ;;  %s1810_s9 = sphi %s2178_s9, %s1223_s9   ;;  %s1806_s27 = sphi %s2177_s27, %s1224_s27  }
 0x2b8   : >> { %1187 = vst [vmem:[%s1806_s27] sm:$0xff] %v1186_v28  ;;  %1189 = vst [vmem:[%s1806_s27 + $0x8] sm:$0xff] %v1188_v29  ;;  %v1192_v31 = vld [vmem:[%s1810_s9 + $0x18] sm:$0xff]  ;;  %v1194_v32 = vld [vmem:[%s1810_s9 + $0x20] sm:$0xff]  ;;  %p1219_p11 = scmp.ge.s32.totalorder %s1218_s18, %s2081_s16  ;;  %p1179_p12 = scmp.ge.s32.totalorder %s1180_s17, %s2081_s16 }
 0x2b9   : >> { %1191 = vst [vmem:[%s1806_s27 + $0x10] sm:$0xff] %v1190_v30  ;;  %v1196_v33 = vld [vmem:[%s1810_s9 + $0x28] sm:$0xff]  ;;  %1193 = vst [vmem:[%s1806_s27 + $0x18] sm:$0xff] %v1192_v31  ;;  %v1198_v34 = vld [vmem:[%s1810_s9 + $0x30] sm:$0xff] }
 0x2ba   : >> { %1195 = vst [vmem:[%s1806_s27 + $0x20] sm:$0xff] %v1194_v32  ;;  %1197 = vst [vmem:[%s1806_s27 + $0x28] sm:$0xff] %v1196_v33  ;;  %v1200_v35 = vld [vmem:[%s1810_s9 + $0x38] sm:$0xff]  ;;  %v1202_v36 = vld [vmem:[%s1810_s9 + $0x40] sm:$0xff]  ;;  %s2186_s18 = smov (%p1219_p11, %s1218_s18), 0 }
 0x2bb   : >> { %1199 = vst [vmem:[%s1806_s27 + $0x30] sm:$0xff] %v1198_v34  ;;  %1201 = vst [vmem:[%s1806_s27 + $0x38] sm:$0xff] %v1200_v35  ;;  %v1204_v37 = vld [vmem:[%s1810_s9 + $0x48] sm:$0xff]  ;;  %v1206_v38 = vld [vmem:[%s1810_s9 + $0x50] sm:$0xff]  ;;  %s1434_s19 = sshll.u32 %s2186_s18, 7  ;;  %s2179_s12 = smov %s2186_s18 }
 0x2bc   : >> { %1203 = vst [vmem:[%s1806_s27 + $0x40] sm:$0xff] %v1202_v36  ;;  %v1208_v39 = vld [vmem:[%s1810_s9 + $0x58] sm:$0xff]  ;;  %1205 = vst [vmem:[%s1806_s27 + $0x48] sm:$0xff] %v1204_v37  ;;  %v1210_v40 = vld [vmem:[%s1810_s9 + $0x60] sm:$0xff]  ;;  %1182 = sbr.rel (!%p1179_p12) target bundleno = 695 (0x2b7), region = 138 }
 0x2bd   : >> { %1207 = vst [vmem:[%s1806_s27 + $0x50] sm:$0xff] %v1206_v38  ;;  %1209 = vst [vmem:[%s1806_s27 + $0x58] sm:$0xff] %v1208_v39  ;;  %v1212_v41 = vld [vmem:[%s1810_s9 + $0x68] sm:$0xff]  ;;  %v1214_v42 = vld [vmem:[%s1810_s9 + $0x70] sm:$0xff] }
 0x2be   : >> { %1211 = vst [vmem:[%s1806_s27 + $0x60] sm:$0xff] %v1210_v40  ;;  %1213 = vst [vmem:[%s1806_s27 + $0x68] sm:$0xff] %v1212_v41  ;;  %v1216_v43 = vld [vmem:[%s1810_s9 + $0x78] sm:$0xff]  ;;  %s1223_s9 = scalar_lea.vmem %s2034_s24, %s1434_s19 [#allocation2]  }
 0x2bf   : >> { %1215 = vst [vmem:[%s1806_s27 + $0x70] sm:$0xff] %v1214_v42  ;;  %1217 = vst [vmem:[%s1806_s27 + $0x78] sm:$0xff] %v1216_v43  ;;  %s1224_s27 = scalar_lea.vmem %s2075_s14, %s1434_s19  }
 0x2c1 PF: > { %s2150_s20 = sand.u32 15, %s2184_s30   ;;  %s1445_s21 = sshll.u32 %s2081_s16, 7 }
 0x2c2   : > { %s1229_s22 = scalar_lea.vmem %s2034_s24, %s1445_s21 [#allocation2]   ;;  %s1231_s23 = scalar_lea.vmem %s2075_s14, %s1445_s21  }
 0x2c3   : > { %p1439_p13 = scmp.le.s32.totalorder %s2150_s20, 0 }
 0x2c4   : > { %s1820_s26 = smov (!%p1439_p13), %s1231_s23   ;;  %s1824_s29 = smov (!%p1439_p13), %s1229_s22  }
 0x2c5   : > { %1322 = sbr.rel (%p1439_p13) target bundleno = 722 (0x2d2), region = 143  ;;  %s1828_s10 = smov (!%p1439_p13), 0  }
 0x2c6   : > { %s1832_s11 = smov (!%p1439_p13), 0  }
 0x2ca LB: >> { %v1241_v44 = vld [vmem:[%s1826_s29] sm:$0xff]  ;;  %s1243_s30 = sadd.s32 1, %s1830_s10  ;;  %s1235_s11 = sadd.s32 1, %s1834_s11   ;;  %s1834_s11 = sphi %s1832_s11, %s1235_s11   ;;  %s1830_s10 = sphi %s1828_s10, %s1829_s10   ;;  %s1826_s29 = sphi %s1824_s29, %s1248_s29   ;;  %s1822_s26 = sphi %s1820_s26, %s1249_s26  }
 0x2cb   : >> { %1242 = vst [vmem:[%s1822_s26] sm:$0xff] %v1241_v44  ;;  %p1244_p0 = scmp.ge.s32.totalorder %s1243_s30, %s2150_s20  ;;  %p1234_p1 = scmp.ge.s32.totalorder %s1235_s11, %s2150_s20 }
 0x2cd   : >> { %s2188_s30 = smov (%p1244_p0, %s1243_s30), 0  ;;  %1237 = sbr.rel (!%p1234_p1) target bundleno = 714 (0x2ca), region = 149 }
 0x2ce   : >> { %s1440_s24 = sshll.u32 %s2188_s30, 3  ;;  %s1829_s10 = smov %s2188_s30  }
 0x2cf   : >> { %s1248_s29 = scalar_lea.vmem %s1229_s22, %s1440_s24 [#allocation2]   ;;  %s1249_s26 = scalar_lea.vmem %s1231_s23, %s1440_s24  }
 0x2d2 PF: > { %p14_p2 = scmp.ge.s32.totalorder %s1891_s28, 6   ;;  %s2180_s24 = smov %s1798_s25 }
 0x2d3   : > { %s2181_s25 = smov %s1899_s8  ;;  %s2182_s26 = smov %s1891_s28 }
 0x2d4   :  { %16 = sbr.rel (!%p14_p2) target bundleno = 2 (0x2), region = 160 }

</bundles_post_ra>
